<compile_context>
chip_gen: v6e
topology: v6e:2x2x1
jax: 0.10.0
libtpu: 0.0.40
codegen_flags: <defaults>
</compile_context>

<pallas_src>
import math

import jax
import jax.numpy as jnp
from jax import lax
from jax.experimental import pallas as pl
from jax.experimental.pallas import tpu as pltpu


_NT = (((1,), (1,)), ((), ()))  # contract last dims of both operands (A @ B^T)


def _lora_down_kernel(x_ref, a_ref, d_ref):
    """d = x @ A^T, accumulated over the K grid axis (axis 1).

    x_ref : (tm, tk)    activation tile
    a_ref : (r_p, tk)   lora_down weight tile (rank padded to 128 lanes)
    d_ref : (tm, r_p)   f32 output tile, resident in VMEM across the K axis
    """
    k = pl.program_id(1)

    @pl.when(k == 0)
    def _init():
        d_ref[...] = jnp.zeros_like(d_ref)

    d_ref[...] += lax.dot_general(x_ref[...], a_ref[...], dimension_numbers=_NT,
                                  preferred_element_type=jnp.float32)


def _lora_base_kernel(x_ref, w_ref, b_ref, d_ref, u_ref, o_ref, acc_ref):
    """One (tm, tn) output tile; grid axis 2 walks the K (in_dim) reduction.

    x_ref : (tm, tk)    activation tile
    w_ref : (tn, tk)    base weight tile (untransposed; contract last dims)
    b_ref : (1, tn)     bias tile (f32)
    d_ref : (tm, r_p)   precomputed x @ A^T (f32), k-invariant
    u_ref : (tn, r_p)   scale * lora_up weight (f32), k-invariant
    acc_ref : (tm, tn)  f32 scratch accumulator
    """
    k = pl.program_id(2)

    @pl.when(k == 0)
    def _init():
        acc_ref[...] = jnp.zeros_like(acc_ref)

    acc_ref[...] += lax.dot_general(x_ref[...], w_ref[...], dimension_numbers=_NT,
                                    preferred_element_type=jnp.float32)

    @pl.when(k == pl.num_programs(2) - 1)
    def _finalize():
        # LoRA up-projection epilogue: paid once per output tile, not per K.
        up = lax.dot_general(d_ref[...], u_ref[...], dimension_numbers=_NT,
                             preferred_element_type=jnp.float32)
        o_ref[...] = (acc_ref[...] + b_ref[...] + up).astype(o_ref.dtype)


def _round_up(v, mult):
    return ((v + mult - 1) // mult) * mult


def _pad2d(arr, rows, cols):
    pr, pc = rows - arr.shape[0], cols - arr.shape[1]
    if pr == 0 and pc == 0:
        return arr
    return jnp.pad(arr, ((0, pr), (0, pc)))


def lora_linear(x, w, b, a_down, b_up, scale=1.0, *,
                tm=512, tn=1024, tk=1024, compute_dtype=None):
    """LoRA linear forward.

    x        : (..., in_dim)
    w        : (out_dim, in_dim)   frozen base weight (NOT transposed)
    b        : (out_dim,) or None  frozen base bias
    a_down   : (rank, in_dim)      lora_down.weight (NOT transposed)
    b_up     : (out_dim, rank)     lora_up.weight   (NOT transposed)
    scale    : lora_alpha. Folded into b_up in the wrapper, so it may be a
               traced value without triggering kernel recompilation.
    tm/tn/tk : tile sizes (clamped down for small problems).
    compute_dtype : optional dtype (e.g. jnp.bfloat16) for x/W/A operands;
               accumulation stays in f32 and the output keeps x.dtype.
    """
    in_dim = x.shape[-1]
    out_dim = w.shape[0]
    rank = a_down.shape[0]
    out_dtype = x.dtype

    lead_shape = x.shape[:-1]
    m = math.prod(lead_shape)
    x2d = x.reshape(m, in_dim)

    if compute_dtype is not None:
        x2d = x2d.astype(compute_dtype)
        w = w.astype(compute_dtype)
        a_down = a_down.astype(compute_dtype)
    op_dtype = x2d.dtype
    op_bytes = jnp.dtype(op_dtype).itemsize
    sub = max(8, 32 // op_bytes)  # sublane packing: 8 (f32), 16 (bf16), 32 (int8)

    # Clamp tiles for small problems while keeping layout alignment.
    tm = min(tm, _round_up(m, sub))
    tn = min(tn, _round_up(out_dim, 128))
    tk = min(tk, _round_up(in_dim, 128))

    m_p = _round_up(m, tm)
    n_p = _round_up(out_dim, tn)
    k_p = _round_up(in_dim, tk)
    r_p = _round_up(max(rank, 128), 128)   # lane-dense LoRA rank

    bias = b if b is not None else jnp.zeros((out_dim,), dtype=w.dtype)

    x_p = _pad2d(x2d, m_p, k_p)
    w_p = _pad2d(w, n_p, k_p)
    a_p = _pad2d(a_down, r_p, k_p)
    b_p = _pad2d(bias.reshape(1, out_dim).astype(jnp.float32), 1, n_p)
    # Fold scale into B once (static w.r.t. the kernel); keep the LoRA-up path
    # in f32 so the epilogue stays full precision.
    u_p = _pad2d(b_up.astype(jnp.float32) * jnp.asarray(scale, jnp.float32),
                 n_p, r_p)

    out_bytes = jnp.dtype(out_dtype).itemsize
    # Double-buffered input/output tiles + f32 accumulator scratch.
    footprint = (2 * (tm * tk + tn * tk) * op_bytes      # x, W tiles
                 + 2 * (tm + tn) * r_p * 4 + 2 * tn * 4  # d, scaled-B, bias
                 + 2 * tm * tn * out_bytes               # output tiles
                 + tm * tn * 4)                          # acc scratch
    vmem_limit = int(min(max(footprint * 5 // 4, 32 * 1024 * 1024),
                         48 * 1024 * 1024))

    # --- 1) LoRA down projection: d = x @ A^T, shape (m_p, r_p), f32. ---
    d = pl.pallas_call(
        _lora_down_kernel,
        out_shape=jax.ShapeDtypeStruct((m_p, r_p), jnp.float32),
        grid=(m_p // tm, k_p // tk),
        in_specs=[
            pl.BlockSpec((tm, tk), lambda i, k: (i, k)),     # x
            pl.BlockSpec((r_p, tk), lambda i, k: (0, k)),    # A (rank, in)
        ],
        out_specs=pl.BlockSpec((tm, r_p), lambda i, k: (i, 0)),
        compiler_params=pltpu.CompilerParams(
            dimension_semantics=("parallel", "arbitrary"),
            vmem_limit_bytes=vmem_limit,
        ),
    )(x_p, a_p)

    # --- 2) Base matmul + bias + LoRA up-projection epilogue. ---
    out_p = pl.pallas_call(
        _lora_base_kernel,
        out_shape=jax.ShapeDtypeStruct((m_p, n_p), out_dtype),
        grid=(m_p // tm, n_p // tn, k_p // tk),
        in_specs=[
            pl.BlockSpec((tm, tk), lambda i, j, k: (i, k)),    # x
            pl.BlockSpec((tn, tk), lambda i, j, k: (j, k)),    # W (out, in)
            pl.BlockSpec((1, tn), lambda i, j, k: (0, j)),     # bias
            pl.BlockSpec((tm, r_p), lambda i, j, k: (i, 0)),   # d = x @ A^T
            pl.BlockSpec((tn, r_p), lambda i, j, k: (j, 0)),   # scale * B
        ],
        out_specs=pl.BlockSpec((tm, tn), lambda i, j, k: (i, j)),
        scratch_shapes=[pltpu.VMEM((tm, tn), jnp.float32)],
        compiler_params=pltpu.CompilerParams(
            dimension_semantics=("parallel", "parallel", "arbitrary"),
            vmem_limit_bytes=vmem_limit,
        ),
    )(x_p, w_p, b_p, d, u_p)

    out2d = out_p[:m, :out_dim]
    return out2d.reshape(*lead_shape, out_dim)


if __name__ == "__main__":
    # Small shapes consistent with an nn.Linear wrapped by LoRALinear, chosen
    # so the tiled grid and the zero-padding paths are actually exercised.
    batch, seq, in_dim, out_dim = 2, 9, 160, 192
    rank = 8
    lora_alpha = 0.5

    key = jax.random.PRNGKey(0)
    kx, kw, kb, ka, ku = jax.random.split(key, 5)

    x = jax.random.normal(kx, (batch, seq, in_dim), dtype=jnp.float32)
    w = jax.random.normal(kw, (out_dim, in_dim), dtype=jnp.float32) * 0.1
    b = jax.random.normal(kb, (out_dim,), dtype=jnp.float32) * 0.1
    # NOTE: the PyTorch module zero-inits the LoRA weights; small random values
    # are used here so the LoRA path of the kernel is actually exercised.
    a_down = jax.random.normal(ka, (rank, in_dim), dtype=jnp.float32) * 0.05
    b_up = jax.random.normal(ku, (out_dim, rank), dtype=jnp.float32) * 0.05

    # Pure-JAX reference of the exact forward semantics.
    ref = (x @ w.T + b) + lora_alpha * ((x @ a_down.T) @ b_up.T)

    # 1) Small explicit tiles -> multi-block (M, N, K) grid (3, 2, 2) with
    #    padding on every dim; exercises accumulator init/finalize and the
    #    separate down-projection kernel.
    out_tiled = lora_linear(x, w, b, a_down, b_up, scale=lora_alpha,
                            tm=8, tn=128, tk=128)
    out_tiled = jax.block_until_ready(out_tiled)
    assert out_tiled.shape == (batch, seq, out_dim)
    assert jnp.allclose(out_tiled, ref, atol=1e-4, rtol=1e-4)

    # 2) Default (production-sized, auto-clamped) tiles, f32 operands.
    out_default = jax.block_until_ready(
        lora_linear(x, w, b, a_down, b_up, scale=lora_alpha))
    assert jnp.allclose(out_default, ref, atol=1e-4, rtol=1e-4)

    # 3) bf16 operands with f32 accumulation (looser tolerance).
    out_bf16 = jax.block_until_ready(
        lora_linear(x, w, b, a_down, b_up, scale=lora_alpha,
                    compute_dtype=jnp.bfloat16))
    assert jnp.allclose(out_bf16, ref, atol=5e-2, rtol=5e-2)

    print("KERNEL_OK")
</pallas_src>

<mosaic_0001>
module attributes {stable_mosaic.version = 11 : i64} {
  func.func @_lora_down_kernel(%arg0: i32, %arg1: i32, %arg2: memref<8x128xf32, #tpu.memory_space<vmem>>, %arg3: memref<128x128xf32, #tpu.memory_space<vmem>>, %arg4: memref<8x128xf32, #tpu.memory_space<vmem>>) attributes {dimension_semantics = [#tpu.dimension_semantics<parallel>, #tpu.dimension_semantics<arbitrary>], iteration_bounds = array<i64: 3, 2>, scalar_prefetch = 0 : i64, scratch_operands = 0 : i64, tpu.core_type = #tpu.core_type<tc>, window_params = [{transform_indices = @transform_0, window_bounds = array<i64: 8, 128>}, {transform_indices = @transform_1, window_bounds = array<i64: 128, 128>}, {transform_indices = @transform_2, window_bounds = array<i64: 8, 128>}]} {
    %c0_i32 = arith.constant 0 : i32
    %0 = arith.cmpi eq, %arg1, %c0_i32 : i32
    %1 = arith.extui %0 : i1 to i32
    %c0_i32_0 = arith.constant 0 : i32
    %2 = arith.cmpi ne, %1, %c0_i32_0 : i32
    scf.if %2 {
      %cst_8 = arith.constant 0.000000e+00 : f32
      %9 = vector.broadcast %cst_8 : f32 to vector<8x128xf32>
      %c0_9 = arith.constant 0 : index
      %c0_10 = arith.constant 0 : index
      %10 = vector.load %arg4[%c0_9, %c0_10] : memref<8x128xf32, #tpu.memory_space<vmem>>, vector<8x128xf32>
      tpu.vector_store %arg4[%c0_9, %c0_10], %9 {strides = array<i32>} : memref<8x128xf32, #tpu.memory_space<vmem>>, vector<8x128xf32>,
    } else {
    }
    %c0 = arith.constant 0 : index
    %c0_1 = arith.constant 0 : index
    %3 = vector.load %arg4[%c0, %c0_1] : memref<8x128xf32, #tpu.memory_space<vmem>>, vector<8x128xf32>
    %c0_2 = arith.constant 0 : index
    %c0_3 = arith.constant 0 : index
    %4 = vector.load %arg2[%c0_2, %c0_3] : memref<8x128xf32, #tpu.memory_space<vmem>>, vector<8x128xf32>
    %c0_4 = arith.constant 0 : index
    %c0_5 = arith.constant 0 : index
    %5 = vector.load %arg3[%c0_4, %c0_5] : memref<128x128xf32, #tpu.memory_space<vmem>>, vector<128x128xf32>
    %cst = arith.constant dense<0.000000e+00> : vector<8x128xf32>
    %6 = tpu.matmul %4, %5, %cst {dimension_numbers = #tpu.dot_dimension_numbers<[1], [1], [0], [0], [0, 0, 1, 0], [], []>} : vector<8x128xf32>, vector<128x128xf32>, vector<8x128xf32> -> vector<8x128xf32>
    %7 = arith.addf %3, %6 : vector<8x128xf32>
    %c0_6 = arith.constant 0 : index
    %c0_7 = arith.constant 0 : index
    %8 = vector.load %arg4[%c0_6, %c0_7] : memref<8x128xf32, #tpu.memory_space<vmem>>, vector<8x128xf32>
    tpu.vector_store %arg4[%c0_6, %c0_7], %7 {strides = array<i32>} : memref<8x128xf32, #tpu.memory_space<vmem>>, vector<8x128xf32>,
    return
  }
  func.func @transform_0(%arg0: i32, %arg1: i32) -> (i32, i32) {
    %c0_i32 = arith.constant 0 : i32
    return %arg0, %arg1 : i32, i32
  }
  func.func @transform_1(%arg0: i32, %arg1: i32) -> (i32, i32) {
    %c0_i32 = arith.constant 0 : i32
    %c0_i32_0 = arith.constant 0 : i32
    return %c0_i32, %arg1 : i32, i32
  }
  func.func @transform_2(%arg0: i32, %arg1: i32) -> (i32, i32) {
    %c0_i32 = arith.constant 0 : i32
    %c0_i32_0 = arith.constant 0 : i32
    return %arg0, %c0_i32 : i32, i32
  }
}

</mosaic_0001>

<bundles_post_ra>
// kernel: tpu_custom_call.1
= control target key start
LH: loop header
LB: loop body
LE: loop exit
PB: predicated region body
PF: predicated region fallthrough
CT: control target
= control target key end

     0   :  { %s1176_s0 = inlined_call_operand.hbm [shape: f32[24,256], index: 0, kind: input, shape index: {}]   ;;  %s1177_s1 = inlined_call_operand.hbm [shape: f32[128,256], index: 1, kind: input, shape index: {}]   ;;  %s1178_s2 = inlined_call_operand.hbm [shape: f32[24,128], index: 2, kind: output, shape index: {}]  }
   0x1   :  { %1185 = sst [smem:[#allocation18_spill]] %s1176_s0 }
   0x2   :  { %7 = vsyncpa [#allocation3], 0 }
   0x3   :  { %9 = vsyncpa [#allocation3 + $0x1], 0 }
   0x4   :  { %10 = vsyncpa [#allocation6], 0 }
   0x5   :  { %12 = vsyncpa [#allocation6 + $0x1], 0 }
   0x6   :  { %13 = vsyncpa [#allocation4], 0 }
   0x7   :  { %15 = vsyncpa [#allocation4 + $0x1], 0  ;;  %s866_s9 = smov 0   ;;  %s868_s10 = smov 0  }
   0x8   :  { %s870_s11 = smov 0   ;;  %s872_s12 = smov 0  }
   0x9   :  { %s874_s13 = smov 0   ;;  %s876_s14 = smov 0  }
   0xa   :  { %s878_s15 = smov 0   ;;  %s880_s16 = smov 0  }
   0xb   :  { %s882_s17 = smov 0   ;;  %s884_s18 = smov 0  }
   0xc   :  { %s886_s19 = smov 0   ;;  %s888_s20 = smov 0  }
   0xd   :  { %s890_s21 = smov 0   ;;  %s892_s22 = smov 0  }
   0xe LB: > { %1186 = sst [smem:[#allocation11_spill]] %s796_s11  ;;  %s429_s23 = sadd.s32 4294967295, %s840_s22   ;;  %s840_s22 = sphi %s892_s22, %s21_s22   ;;  %s836_s21 = sphi %s890_s21, %s1226_s21   ;;  %s832_s20 = sphi %s888_s20, %s1225_s20   ;;  %s828_s19 = sphi %s886_s19, %s1224_s19   ;;  %s824_s18 = sphi %s884_s18, %s1223_s18   ;;  %s820_s17 = sphi %s882_s17, %s1213_s17   ;;  %s816_s16 = sphi %s880_s16, %s1222_s16   ;;  %s812_s15 = sphi %s878_s15, %s1221_s15   ;;  %s808_s14 = sphi %s876_s14, %s1220_s14   ;;  %s804_s13 = sphi %s874_s13, %s1219_s13   ;;  %s800_s12 = sphi %s872_s12, %s1218_s12   ;;  %s796_s11 = sphi %s870_s11, %s1210_s11   ;;  %s792_s10 = sphi %s868_s10, %s1217_s10   ;;  %s788_s9 = sphi %s866_s9, %s1216_s9  }
   0xf   : > { %1187 = sst [smem:[#allocation12_spill]] %s820_s17  ;;  %s30_s25 = sadd.s32 1, %s832_s20 }
  0x10   : > { %s33_s26 = sadd.s32 1, %s836_s21  ;;  %p31_p0 = scmp.ge.s32.totalorder %s30_s25, 2 }
  0x11   : > { %s42_s27 = sadd.s32 1, %s820_s17  ;;  %p49_p1 = scmp.ne.s32.totalorder %s820_s17, %s816_s16 }
  0x12   : > { %p50_p2 = scmp.eq.s32.totalorder %s840_s22, 0  ;;  %s1228_s25 = smov (%p31_p0, %s30_s25), 0 }
  0x13   : > { %1188 = sst [smem:[#allocation13_spill]] %s1228_s25  ;;  %s1230_s26 = smov (!%p31_p0, %s33_s26), %s836_s21 }
  0x14   : > { %s38_s28 = ssub.s32 %s832_s20, %s1228_s25  ;;  %p949_p3 = por %p50_p2, %p49_p1 }
  0x15   : > { %p35_p4 = scmp.ge.s32.totalorder %s1230_s26, 3  ;;  %p55_p5 = scmp.ne.s32.totalorder %s816_s16, %s812_s15 }
  0x16   : > { %p956_p6 = scmp.eq.s32.totalorder %s429_s23, 0  ;;  %p66_p7 = scmp.eq.s32.totalorder %s38_s28, 0 }
  0x17   : > { %s1232_s26 = smov (%p35_p4, %s1230_s26), 0  ;;  %s68_s4 = sadd.s32 1, %s808_s14 }
  0x18   : > { %1191 = sst [smem:[#allocation14_spill]] %s1232_s26  ;;  %p964_p8 = por %p956_p6, %p55_p5 }
  0x19   : > { %s37_s5 = ssub.s32 %s836_s21, %s1232_s26  ;;  %p75_p9 = scmp.ne.s32.totalorder %s808_s14, %s804_s13 }
  0x1a   : > { %s39_s6 = sor.u32 %s38_s28, %s37_s5  ;;  %p81_p10 = scmp.ne.s32.totalorder %s804_s13, %s800_s12 }
  0x1b   : > { %p40_p11 = scmp.eq.s32.totalorder %s39_s6, 0  ;;  %p977_p12 = por %p75_p9, %p50_p2 }
  0x1c   : > { %s982_s8 = scalar_select %p66_p7, %s808_s14, %s68_s4  }
  0x1d   : > { %s985_s15 = scalar_select %p40_p11, %s820_s17, %s42_s27  }
  0x1e   : > { %1194 = sst [smem:[#allocation15_spill]] %s982_s8  ;;  %p989_p13 = por %p81_p10, %p956_p6 }
  0x1f   : > { %1195 = sst [smem:[#allocation16_spill]] %s985_s15  ;;  %p92_p0 = scmp.eq.s32.totalorder %s37_s5, 0 }
  0x20   : > { %s1196_s24 = scalar_select %p989_p13, 1, 0 }
  0x21   : > { %s94_s12 = sadd.s32 1, %s796_s11  ;;  %p104_p1 = scmp.ne.s32.totalorder %s796_s11, %s792_s10 }
  0x22   : > { %s997_s28 = scalar_select %p92_p0, %s796_s11, %s94_s12  }
  0x23   : > { %p105_p2 = scmp.eq.s32.totalorder %s429_s23, 5  ;;  %p110_p4 = scmp.ne.s32.totalorder %s792_s10, %s788_s9 }
  0x24   : > { %1197 = sst [smem:[#allocation17_spill]] %s997_s28  ;;  %s1198_s4 = sadd.s32 4294967294, %s840_s22  }
  0x25   : > { %p111_p5 = scmp.eq.s32.totalorder %s1198_s4, 5  ;;  %p1005_p7 = por %p105_p2, %p104_p1 }
  0x26   : > { %p516_p6 = scmp.lt.s32.totalorder %s840_s22, 6  ;;  %s131_s5 = sand.u32 1, %s820_s17  }
  0x27   : > { %s1199_s27 = scalar_select %p1005_p7, 1, 0 }
  0x28   : > { %p1010_p9 = por %p111_p5, %p110_p4  ;;  %s433_s6 = sshll.u32 %s131_s5, 3 }
  0x29   : > { %s434_s12 = sshll.u32 %s836_s21, 1  ;;  %s135_s23 = scalar_lea.vmem [#allocation2], %s433_s6 }
  0x2a   : > { %s1200_s30 = scalar_select %p1010_p9, 1, 0 }
  0x2b   : > { %s140_s26 = sadd.s32 %s832_s20, %s434_s12  ;;  %s144_s25 = sshll.u32 %s135_s23, 4  ;;  %s145_s25 = int_to_ptr.vmem [resolvable:$true] %s144_s25 }
  0x2c   : > { %s435_s15 = sshll.u32 %s140_s26, 7  ;;  %s1201_s0 = sld [smem:[#allocation18_spill]] }
  0x2d   : > { %p1022_p10 = pnand %p516_p6, %p949_p3  ;;  %p1028_p11 = pnand %p516_p6, %p977_p12 }
  0x2e   : > { %p438_p0 = scmp.ge.s32.totalorder %s840_s22, 1  ;;  %p169_p1 = scmp.lt.s32.totalorder %s840_s22, 7 }
  0x2f   : > { %s132_s6 = scalar_lea.sflag [#allocation3], %s131_s5  ;;  %p638_p2 = pneg %p1022_p10 }
  0x30   : > { %s649_s26 = scalar_lea.vmem %s145_s25, 128  ;;  %s842_s29 = smov [#allocation2]  }
  0x31   : > { %p650_p4 = scmp.ne.s32.totalorder %s145_s25, %s649_s26  ;;  %s654_s8 = sshll.u32 %s842_s29, 4  ;;  %s655_s8 = int_to_ptr.vmem [resolvable:$false] %s654_s8 }
  0x32   : > { %s142_s28 = scalar_lea.hbm %s1201_s0, %s435_s15  ;;  %s656_s15 = scalar_lea.vmem %s655_s8, 256 }
  0x33   : > { %p652_p5 = pnand %p650_p4, %p638_p2  ;;  %p657_p3 = scmp.lt.s32.totalorder %s145_s25, %s655_s8 }
  0x34   : > { %p658_p7 = scmp.lt.s32.totalorder %s656_s15, %s649_s26 }
  0x35   : > { %p653_p9 = pneg %p652_p5 }
  0x36   : > { %p659_p13 = por %p658_p7, %p657_p3 }
  0x38   : > { %p660_p12 = pnand %p659_p13, %p653_p9 }
  0x3a   : > { %663 = shalt.err (!%p660_p12)
}
  0x3b   : > { %508 = dma.hbm_to_vmem [thread:$0]  (!%p1022_p10), %s142_s28, 128, %s145_s25, %s132_s6  }
  0x3c   : > { %p1042_p6 = pnand %p438_p0, %p169_p1  ;;  %s151_s5 = sand.u32 1, %s808_s14  }
  0x3d   : > { %s437_s12 = sshll.u32 %s832_s20, 7  ;;  %s436_s23 = sshll.u32 %s151_s5, 7 }
  0x3e   : > { %s160_s29 = scalar_lea.hbm %s1177_s1, %s437_s12  ;;  %s155_s11 = scalar_lea.vmem [#allocation5], %s436_s23 }
  0x3f   : > { %s161_s8 = sshll.u32 %s155_s11, 4  ;;  %s152_s15 = scalar_lea.sflag [#allocation6], %s151_s5  ;;  %s162_s8 = int_to_ptr.vmem [resolvable:$true] %s161_s8 }
  0x40   : > { %p666_p13 = pneg %p1028_p11  ;;  %s677_s25 = scalar_lea.vmem %s162_s8, 2048 }
  0x41   : > { %p678_p7 = scmp.ne.s32.totalorder %s162_s8, %s677_s25  ;;  %s843_s28 = smov [#allocation5]  }
  0x42   : > { %s682_s6 = sshll.u32 %s843_s28, 4  ;;  %s683_s6 = int_to_ptr.vmem [resolvable:$false] %s682_s6 }
  0x43   : > { %p680_p9 = pnand %p678_p7, %p666_p13  ;;  %s684_s0 = scalar_lea.vmem %s683_s6, 4096 }
  0x44   : > { %p685_p0 = scmp.lt.s32.totalorder %s162_s8, %s683_s6  ;;  %p686_p1 = scmp.lt.s32.totalorder %s684_s0, %s677_s25 }
  0x45   : > { %p681_p10 = pneg %p680_p9 }
  0x46   : > { %p687_p2 = por %p686_p1, %p685_p0 }
  0x48   : > { %p688_p4 = pnand %p687_p2, %p681_p10 }
  0x4a   : > { %691 = shalt.err (!%p688_p4)
}
  0x4b   : > { %s844_s12 = smov 256   ;;  %s845_s23 = smov 128  }
  0x4c   : > { %s846_s4 = smov 8   ;;  %173 = sbr.rel (%p1042_p6) target bundleno = 368 (0x170), region = 28 }
  0x4d   : > { %511 = dma.hbm_to_vmem [thread:$0]  (!%p1028_p11), %s160_s29, 2048, %s162_s8, %s152_s15, %s844_s12, %s845_s23, %s846_s4  }
  0x4e   : > { %s175_s5 = sand.u32 (!%p1042_p6), 1, %s816_s16  }
  0x4f   : > { %s1058_s26 = sshll.u32 (!%p1042_p6), %s175_s5, 3  ;;  %s176_s11 = scalar_lea.sflag (!%p1042_p6), [#allocation3], %s175_s5 }
  0x50   : > { %s179_s0 = scalar_lea.vmem (!%p1042_p6), [#allocation2], %s1058_s26 }
  0x51   : > { %775 = dma.done.wait (%p964_p8), %s176_s11, 128  }
  0x52   : > { %777 = vsyncadd (%p964_p8), %s176_s11, 4294967168  ;;  %s184_s17 = sand.u32 1, %s804_s13   ;;  %p1205_p11 = scmp.ne.s32.totalorder %s1196_s24, 0 }
  0x53   : > { %s440_s29 = sshll.u32 %s184_s17, 7  ;;  %s185_s8 = scalar_lea.sflag [#allocation6], %s184_s17 }
  0x54   : > { %s1066_s7 = scalar_lea.vmem [#allocation5], %s440_s29 }
  0x55   : > { %779 = dma.done.wait (%p1205_p11), %s185_s8, 2048  }
  0x56   : > { %781 = vsyncadd (%p1205_p11), %s185_s8, 4294965248  ;;  %s211_s15 = sand.u32 1, %s792_s10   ;;  %p442_p8 = scmp.ne.s32.totalorder %s824_s18, 0 }
  0x57   : > { %s441_s25 = sshll.u32 %s211_s15, 3 }
  0x58   : > { %s1075_s28 = scalar_lea.vmem [#allocation7], %s441_s25  ;;  %217 = sbr.rel (%p442_p8) target bundleno = 95 (0x5f), region = 40 }
  0x5d   : > { %v847_v0 = vmov 0.0  }
  0x5e   : > { %218 = vst [vmem:[%s1075_s28] sm:$0xff] %v847_v0 }
  0x5f PF: > { %v236_v1 = vld [vmem:[%s1066_s7 + $0x78] sm:$0xff]  ;;  %v848_v2 = vmov 0.0   ;;  %vm849_vm0 = vmmov 0   ;;  %v235_v3 = vld [vmem:[%s1066_s7 + $0x70] sm:$0xff]  ;;  %v234_v4 = vld [vmem:[%s1066_s7 + $0x68] sm:$0xff]  ;;  %s444_s18 = sshll.u32 %s828_s19, 7 }
  0x60   : > { %464 = vmatprep.subr.mxu0 %v848_v2  ;;  %496 = vmatprep.mubr.msk.f32.mxu0 %vm849_vm0, %v848_v2  ;;  %v233_v5 = vld [vmem:[%s1066_s7 + $0x60] sm:$0xff]  ;;  %v232_v6 = vld [vmem:[%s1066_s7 + $0x58] sm:$0xff]  ;;  %v231_v7 = vld [vmem:[%s1066_s7 + $0x50] sm:$0xff]  ;;  %s323_s24 = sshll.u32 %s1075_s28, 4  ;;  %s1103_s12 = scalar_lea.hbm %s1178_s2, %s444_s18  ;;  %s324_s24 = int_to_ptr.vmem [resolvable:$true] %s323_s24 }
  0x61   : > { %465 = vmatpush3.xpose.msra.mxu0 %v236_v1  ;;  %v230_v8 = vld [vmem:[%s1066_s7 + $0x48] sm:$0xff]  ;;  %v229_v9 = vld [vmem:[%s1066_s7 + $0x40] sm:$0xff]  ;;  %v228_v10 = vld [vmem:[%s1066_s7 + $0x38] sm:$0xff]  ;;  %s310_s23 = scalar_lea.sflag [#allocation4], %s211_s15  ;;  %s692_s4 = scalar_lea.vmem %s324_s24, 128 }
  0x62   : > { %466 = vmatprep.subr.mxu0 %v848_v2  ;;  %v227_v11 = vld [vmem:[%s1066_s7 + $0x30] sm:$0xff]  ;;  %v226_v12 = vld [vmem:[%s1066_s7 + $0x28] sm:$0xff]  ;;  %v225_v13 = vld [vmem:[%s1066_s7 + $0x20] sm:$0xff]  ;;  %p693_p5 = scmp.ne.s32.totalorder %s324_s24, %s692_s4  ;;  %p1206_p3 = scmp.ne.s32.totalorder %s1199_s27, 0 }
  0x63   : > { %v224_v14 = vld [vmem:[%s1066_s7 + $0x18] sm:$0xff]  ;;  %v223_v15 = vld [vmem:[%s1066_s7 + $0x10] sm:$0xff]  ;;  %v222_v16 = vld [vmem:[%s1066_s7 + $0x8] sm:$0xff]  ;;  %s850_s5 = smov [#allocation7]  }
  0x64   : > { %v221_v17 = vld [vmem:[%s1066_s7] sm:$0xff]  ;;  %v220_v18 = vld [vmem:[%s179_s0] sm:$0xff]  ;;  %p694_p12 = pnand %p693_p5, %p1206_p3  ;;  %s696_s19 = sshll.u32 %s850_s5, 4  ;;  %s697_s19 = int_to_ptr.vmem [resolvable:$false] %s696_s19 }
  0x65   : > { %467 = vmatpush3.xpose.msra.mxu0 %v235_v3  ;;  %v219_v19 = vld [vmem:[%s1075_s28] sm:$0xff]  ;;  %s698_s26 = scalar_lea.vmem %s697_s19, 256  ;;  %p699_p13 = scmp.lt.s32.totalorder %s324_s24, %s697_s19 }
  0x66   : > { %468 = vmatprep.subr.mxu0 %v848_v2  ;;  %p695_p6 = pneg %p694_p12  ;;  %p700_p7 = scmp.lt.s32.totalorder %s698_s26, %s692_s4 }
  0x68   : > { %p701_p9 = por %p700_p7, %p699_p13 }
  0x69   : > { %469 = vmatpush3.xpose.msra.mxu0 %v234_v4 }
  0x6a   : > { %470 = vmatprep.subr.mxu0 %v848_v2  ;;  %p702_p10 = pnand %p701_p9, %p695_p6 }
  0x6d   : > { %471 = vmatpush3.xpose.msra.mxu0 %v233_v5 }
  0x6e   : > { %472 = vmatprep.subr.mxu0 %v848_v2 }
  0x71   : > { %473 = vmatpush3.xpose.msra.mxu0 %v232_v6 }
  0x72   : > { %474 = vmatprep.subr.mxu0 %v848_v2 }
  0x75   : > { %475 = vmatpush3.xpose.msra.mxu0 %v231_v7 }
  0x76   : > { %476 = vmatprep.subr.mxu0 %v848_v2 }
  0x79   : > { %477 = vmatpush3.xpose.msra.mxu0 %v230_v8 }
  0x7a   : > { %478 = vmatprep.subr.mxu0 %v848_v2 }
  0x7d   : > { %479 = vmatpush3.xpose.msra.mxu0 %v229_v9 }
  0x7e   : > { %480 = vmatprep.subr.mxu0 %v848_v2 }
  0x81   : > { %481 = vmatpush3.xpose.msra.mxu0 %v228_v10 }
  0x82   : > { %482 = vmatprep.subr.mxu0 %v848_v2 }
  0x85   : > { %483 = vmatpush3.xpose.msra.mxu0 %v227_v11 }
  0x86   : > { %484 = vmatprep.subr.mxu0 %v848_v2 }
  0x89   : > { %485 = vmatpush3.xpose.msra.mxu0 %v226_v12 }
  0x8a   : > { %486 = vmatprep.subr.mxu0 %v848_v2 }
  0x8d   : > { %487 = vmatpush3.xpose.msra.mxu0 %v225_v13 }
  0x8e   : > { %488 = vmatprep.subr.mxu0 %v848_v2 }
  0x91   : > { %489 = vmatpush3.xpose.msra.mxu0 %v224_v14 }
  0x92   : > { %490 = vmatprep.subr.mxu0 %v848_v2 }
  0x95   : > { %491 = vmatpush3.xpose.msra.mxu0 %v223_v15 }
  0x96   : > { %492 = vmatprep.subr.mxu0 %v848_v2 }
  0x99   : > { %493 = vmatpush3.xpose.msra.mxu0 %v222_v16 }
  0x9a   : > { %494 = vmatprep.subr.mxu0 %v848_v2 }
  0x9d   : > { %495 = vmatpush3.xpose.msra.mxu0 %v221_v17 }
  0xa0   : > { %497 = vmatmul.mubr.f32.vlgmr.msra.gmra.mxu0 %v220_v18 }
 0x160   : > { %v303_v20 = vpop.f32.mrf.mxu0 }
 0x161   : > { %v307_v21 = vadd.f32 %v303_v20, %v219_v19 }
 0x162   : > { %v498_v22 = vpop.f32.mrf.mxu0 }
 0x163   : > { %308 = vst [vmem:[%s1075_s28] sm:$0xff] %v307_v21 }
 0x164   : > { %705 = shalt.err (!%p702_p10)
}
 0x165   : > { %s706_s11 = scalar_lea.hbm %s1103_s12, 128  ;;  %s710_s29 = scalar_lea.hbm %s1178_s2, 384 }
 0x166   : > { %p707_p0 = scmp.ne.s32.totalorder %s1103_s12, %s706_s11  ;;  %p711_p4 = scmp.lt.s32.totalorder %s1103_s12, %s1178_s2 }
 0x167   : > { %p712_p11 = scmp.lt.s32.totalorder %s710_s29, %s706_s11 }
 0x168   : > { %p708_p1 = pnand %p707_p0, %p1206_p3 }
 0x169   : > { %p713_p8 = por %p712_p11, %p711_p4 }
 0x16a   : > { %p709_p2 = pneg %p708_p1 }
 0x16c   : > { %p714_p5 = pnand %p713_p8, %p709_p2 }
 0x16e   : > { %717 = shalt.err (!%p714_p5)
}
 0x16f   : > { %503 = dma.vmem_to_hbm [thread:$0]  (%p1206_p3), %s324_s24, 128, %s1103_s12, %s310_s23  }
 0x170 PF: > { %p517_p12 = scmp.ge.s32.totalorder %s840_s22, 2  ;;  %s335_s15 = sand.u32 1, %s788_s9  }
 0x171   : > { %p1207_p6 = scmp.ne.s32.totalorder %s1200_s30, 0  ;;  %s336_s25 = scalar_lea.sflag [#allocation4], %s335_s15 }
 0x173   : > { %p513_p13 = pnand %p517_p12, %p1207_p6 }
 0x175   : > { %p514_p7 = pneg %p513_p13 }
 0x177   : > { %783 = dma.done.wait (%p514_p7), %s336_s25, 128  }
 0x178   : > { %785 = vsyncadd (%p514_p7), %s336_s25, 4294967168  ;;  %s21_s22 = sadd.s32 1, %s840_s22   ;;  %s1209_s27 = sld [smem:[#allocation11_spill]] }
 0x179   : > { %p1129_p9 = scmp.ge.s32.totalorder %s21_s22, 8   ;;  %s1210_s11 = sld [smem:[#allocation17_spill]] }
 0x17a   : > { %s1211_s18 = sld [smem:[#allocation15_spill]]  ;;  %s1216_s9 = smov %s792_s10 }
 0x17b   : > { %s1212_s24 = sld [smem:[#allocation12_spill]]  ;;  %s1218_s12 = smov %s804_s13 }
 0x17c   : > { %s1213_s17 = sld [smem:[#allocation16_spill]]  ;;  %s1219_s13 = smov %s808_s14 }
 0x17d   : > { %s1214_s30 = sld [smem:[#allocation13_spill]]  ;;  %s1221_s15 = smov %s816_s16 }
 0x17e   : > { %s1215_s3 = sld [smem:[#allocation14_spill]]  ;;  %s1217_s10 = smov %s1209_s27 }
 0x17f   : > { %s1224_s19 = smov %s836_s21 }
 0x180   : > { %s1220_s14 = smov %s1211_s18  ;;  %s1223_s18 = smov %s832_s20 }
 0x181   : > { %s1222_s16 = smov %s1212_s24  ;;  %20 = sbr.rel (!%p1129_p9) target bundleno = 14 (0xe), region = 90 }
 0x183   : > { %s1225_s20 = smov %s1214_s30 }
 0x184   : > { %s1226_s21 = smov %s1215_s3 }
 0x186   :  { %341 = vsyncpa [#allocation3], 1 }
 0x187   :  { %343 = vsyncpa [#allocation3 + $0x1], 1 }
 0x188   :  { %344 = vsyncpa [#allocation6], 1 }
 0x189   :  { %346 = vsyncpa [#allocation6 + $0x1], 1 }
 0x18a   :  { %347 = vsyncpa [#allocation4], 1 }
 0x18b   :  { %349 = vsyncpa [#allocation4 + $0x1], 1 }

</bundles_post_ra>
